<compile_context>
chip_gen: v7x
topology: tpu7x:2x2x1
jax: 0.10.0
libtpu: 0.0.40
codegen_flags: <defaults>
</compile_context>

<pallas_src>
import functools

import jax
import jax.numpy as jnp
from jax.experimental import pallas as pl
from jax.experimental.pallas import tpu as pltpu

_LANE = 128
_SUBLANE = 8
_SQRT_HALF = 0.7071067811865476


def _round_up(n, m):
    return (n + m - 1) // m * m


def _pad_to(a, shape):
    return jnp.pad(a, [(0, t - s) for s, t in zip(a.shape, shape)])


def _erf(x):
    # Abramowitz & Stegun 7.1.26 rational approximation (|err| < 1.5e-7):
    # keeps PyTorch's exact (erf) GELU semantics to f32 precision while using
    # only ops guaranteed to lower on the TPU VPU/EUP.
    p = 0.3275911
    a1, a2, a3, a4, a5 = (0.254829592, -0.284496736, 1.421413741,
                          -1.453152027, 1.061405429)
    sgn = jnp.where(x >= 0.0, 1.0, -1.0)
    ax = jnp.abs(x)
    t = 1.0 / (1.0 + p * ax)
    poly = ((((a5 * t + a4) * t + a3) * t + a2) * t + a1) * t
    return sgn * (1.0 - poly * jnp.exp(-ax * ax))


def _gelu_exact(x):
    # nn.GELU() default (erf-based).
    return 0.5 * x * (1.0 + _erf(x * _SQRT_HALF))


# -----------------------------------------------------------------------------
# Fused kernel: patch-embed -> depth x MLPblock -> mean/affine/head/log_softmax
# -----------------------------------------------------------------------------
def _resmlp_kernel(
    patch_ref,   # (Bt, Np, Kp)  f32   flattened image patches
    ew_ref,      # (Kp, Dp)      bf16  patch-embed weight (Conv2d as matmul)
    cvec_ref,    # (4, Dp)       f32   [embed_b, head_alpha, head_beta, pad]
    wt_ref,      # (Np, Np)      bf16  token-mix weight   (depth step d)
    btk_ref,     # (Np, 1)       f32   token-mix bias     (depth step d)
    vecd_ref,    # (8, Dp)       f32   [a1, be1, a2, be2, b2, g1, g2, pad]
    b1_ref,      # (1, Hp)       f32   ff Linear1 bias    (depth step d)
    w1_ref,      # (Dp, Hp)      bf16  ff Linear1 weight^T
    w2_ref,      # (Hp, Dp)      bf16  ff Linear2 weight^T
    wh_ref,      # (Dp, Cp)      bf16  head weight^T
    bh_ref,      # (1, Cp)       f32   head bias
    out_ref,     # (Bt, Cp)      f32   log-probabilities
    acc_ref,     # (Bt, Np, Dp)  f32   VMEM-resident token tensor (scratch)
    *, num_patch, num_classes,
):
    d = pl.program_id(1)
    n_depth = pl.num_programs(1)
    bt_sz, n_pad, d_pad = acc_ref.shape
    k_pad = patch_ref.shape[-1]

    # ---- prologue: patch embedding (once per batch tile) --------------------
    @pl.when(d == 0)
    def _():
        p2d = patch_ref[...].reshape(bt_sz * n_pad, k_pad).astype(jnp.bfloat16)
        emb = jnp.dot(p2d, ew_ref[...], preferred_element_type=jnp.float32)
        acc_ref[...] = (emb + cvec_ref[0:1, :]).reshape(bt_sz, n_pad, d_pad)

    # ---- MLPblock number d ---------------------------------------------------
    a1, be1 = vecd_ref[0:1, :], vecd_ref[1:2, :]
    a2, be2 = vecd_ref[2:3, :], vecd_ref[3:4, :]
    b2 = vecd_ref[4:5, :]
    g1, g2 = vecd_ref[5:6, :], vecd_ref[6:7, :]

    x = acc_ref[...]
    xp = x * a1 + be1                                   # pre_affine

    # token mix: t[b, m, :] = sum_n Wt[m, n] * xp[b, n, :] + bt[m]
    wt_b = jnp.broadcast_to(wt_ref[...], (bt_sz, n_pad, n_pad))
    t = jax.lax.dot_general(
        wt_b, xp.astype(jnp.bfloat16),
        dimension_numbers=(((2,), (1,)), ((0,), (0,))),
        preferred_element_type=jnp.float32) + btk_ref[...]
    x1 = xp + g1 * t

    x2 = x1 * a2 + be2                                  # post_affine

    # FeedForward (Dropout p=0.0 is the identity)
    x2d = x2.reshape(bt_sz * n_pad, d_pad)
    h = jnp.dot(x2d.astype(jnp.bfloat16), w1_ref[...],
                preferred_element_type=jnp.float32) + b1_ref[...]
    h = _gelu_exact(h)
    ff = jnp.dot(h.astype(jnp.bfloat16), w2_ref[...],
                 preferred_element_type=jnp.float32) + b2
    x_new = x2 + (g2 * ff).reshape(bt_sz, n_pad, d_pad)
    acc_ref[...] = x_new

    # ---- epilogue: mean pool + final affine + head + log_softmax ------------
    @pl.when(d == n_depth - 1)
    def _():
        xa = x_new
        if num_patch != n_pad:  # mask padded token rows out of the mean
            rows = jax.lax.broadcasted_iota(jnp.int32, (1, n_pad, 1), 1)
            xa = jnp.where(rows < num_patch, xa, 0.0)
        pooled = jnp.sum(xa, axis=1) * (1.0 / num_patch)           # (Bt, Dp)
        # final Aff folded past the mean: mean(x*a + b) == mean(x)*a + b
        pooled = pooled * cvec_ref[1:2, :] + cvec_ref[2:3, :]
        logits = jnp.dot(pooled.astype(jnp.bfloat16), wh_ref[...],
                         preferred_element_type=jnp.float32) + bh_ref[...]
        cols = jax.lax.broadcasted_iota(jnp.int32, logits.shape, 1)
        logits = jnp.where(cols < num_classes, logits, -1e30)      # mask pad classes
        s = logits - jnp.max(logits, axis=-1, keepdims=True)
        out_ref[...] = s - jnp.log(jnp.sum(jnp.exp(s), axis=-1, keepdims=True))


# -----------------------------------------------------------------------------
# pallas_call plumbing
# -----------------------------------------------------------------------------
def _pick_batch_tile(B, n_pad, d_pad, budget_bytes=8 << 20):
    """Largest BlockSpec-legal batch tile whose f32 residency fits the budget."""
    per_img = max(1, n_pad * d_pad * 4)
    cap = max(1, budget_bytes // per_img)
    if B <= cap:
        return B
    divs8 = [t for t in range(8, min(B, cap) + 1, 8) if B % t == 0]
    if divs8:
        return max(divs8)
    return B  # no legal multiple-of-8 divisor: keep whole batch (soft budget)


def _resmlp_call(patches, params, *, num_patch, num_classes):
    B, n_pad, k_pad = patches.shape
    depth = params["wt"].shape[0]
    d_pad = params["embed_w"].shape[1]
    h_pad = params["w1"].shape[-1]
    c_pad = params["wh"].shape[-1]
    bt_tile = _pick_batch_tile(B, n_pad, d_pad)

    kernel = functools.partial(
        _resmlp_kernel, num_patch=num_patch, num_classes=num_classes)

    logits = pl.pallas_call(
        kernel,
        out_shape=jax.ShapeDtypeStruct((B, c_pad), jnp.float32),
        grid=(B // bt_tile, depth),
        in_specs=[
            pl.BlockSpec((bt_tile, n_pad, k_pad), lambda b, d: (b, 0, 0)),  # patches
            pl.BlockSpec((k_pad, d_pad), lambda b, d: (0, 0)),              # embed W
            pl.BlockSpec((4, d_pad), lambda b, d: (0, 0)),                  # const vecs
            pl.BlockSpec((None, n_pad, n_pad), lambda b, d: (d, 0, 0)),     # Wt[d]
            pl.BlockSpec((None, n_pad, 1), lambda b, d: (d, 0, 0)),         # bt[d]
            pl.BlockSpec((None, 8, d_pad), lambda b, d: (d, 0, 0)),         # packed vecs[d]
            pl.BlockSpec((None, 1, h_pad), lambda b, d: (d, 0, 0)),         # b1[d]
            pl.BlockSpec((None, d_pad, h_pad), lambda b, d: (d, 0, 0)),     # W1^T[d]
            pl.BlockSpec((None, h_pad, d_pad), lambda b, d: (d, 0, 0)),     # W2^T[d]
            pl.BlockSpec((d_pad, c_pad), lambda b, d: (0, 0)),              # head W^T
            pl.BlockSpec((1, c_pad), lambda b, d: (0, 0)),                  # head bias
        ],
        out_specs=pl.BlockSpec((bt_tile, c_pad), lambda b, d: (b, 0)),
        scratch_shapes=[pltpu.VMEM((bt_tile, n_pad, d_pad), jnp.float32)],
        compiler_params=pltpu.CompilerParams(
            dimension_semantics=("parallel", "arbitrary"),
            vmem_limit_bytes=48 * 1024 * 1024,
        ),
    )(patches, params["embed_w"], params["cvec"],
      params["wt"], params["bt"], params["vecd"], params["b1"],
      params["w1"], params["w2"],
      params["wh"], params["bh"])
    return logits[:, :num_classes]


@functools.partial(jax.jit, static_argnames=("patch_size", "num_classes"))
def resmlp_forward(x, params, *, patch_size, num_classes):
    B, C, H, W = x.shape
    hp, wp = H // patch_size, W // patch_size
    num_patch = hp * wp
    K = C * patch_size * patch_size
    # Non-overlapping patch extraction; feature order (c, ph, pw) matches the
    # Conv2d weight layout so Conv2d(patch,stride=patch) == patches @ W^T + b.
    xr = x.reshape(B, C, hp, patch_size, wp, patch_size)
    patches = xr.transpose(0, 2, 4, 1, 3, 5).reshape(B, num_patch, K)
    patches = _pad_to(
        patches, (B, _round_up(num_patch, _SUBLANE), _round_up(K, _LANE)))
    return _resmlp_call(patches, params,
                        num_patch=num_patch, num_classes=num_classes)


# -----------------------------------------------------------------------------
# Deterministic synthetic parameters (padded + depth-stacked for the kernel)
# -----------------------------------------------------------------------------
def init_params(key, *, in_channels, dim, num_classes, patch_size, image_size,
                depth, mlp_dim, init_values=1e-4):
    num_patch = (image_size // patch_size) ** 2
    K = in_channels * patch_size * patch_size
    Np = _round_up(num_patch, _SUBLANE)
    Kp = _round_up(K, _LANE)
    Dp = _round_up(dim, _LANE)
    Hp = _round_up(mlp_dim, _LANE)
    Cp = _round_up(num_classes, _LANE)

    keys = jax.random.split(key, 6 * depth + 4)
    ki = iter(keys)
    std = 0.02

    conv_w = jax.random.normal(
        next(ki), (dim, in_channels, patch_size, patch_size), jnp.float32) * std
    conv_b = jax.random.normal(next(ki), (dim,), jnp.float32) * std
    embed_w = _pad_to(conv_w.reshape(dim, K).T, (Kp, Dp)).astype(jnp.bfloat16)
    embed_b = _pad_to(conv_b, (Dp,))

    ones_d = _pad_to(jnp.ones((dim,), jnp.float32), (Dp,))     # pad channels -> 0
    zeros_d = jnp.zeros((Dp,), jnp.float32)
    gamma_d = _pad_to(jnp.full((dim,), init_values, jnp.float32), (Dp,))

    wt_l, bt_l, vecd_l, b1_l, w1_l, w2_l = [], [], [], [], [], []
    for _ in range(depth):
        wt = jax.random.normal(next(ki), (num_patch, num_patch), jnp.float32) * std
        bt = jax.random.normal(next(ki), (num_patch,), jnp.float32) * std
        w1 = jax.random.normal(next(ki), (mlp_dim, dim), jnp.float32) * std
        b1 = jax.random.normal(next(ki), (mlp_dim,), jnp.float32) * std
        w2 = jax.random.normal(next(ki), (dim, mlp_dim), jnp.float32) * std
        b2 = jax.random.normal(next(ki), (dim,), jnp.float32) * std
        wt_l.append(_pad_to(wt, (Np, Np)).astype(jnp.bfloat16))
        bt_l.append(_pad_to(bt.reshape(num_patch, 1), (Np, 1)))
        vecd_l.append(jnp.stack([ones_d, zeros_d,             # pre_affine  a, b
                                 ones_d, zeros_d,             # post_affine a, b
                                 _pad_to(b2, (Dp,)),           # ff Linear2 bias
                                 gamma_d, gamma_d,             # gamma_1, gamma_2
                                 zeros_d]))                    # pad row (sublane 8)
        b1_l.append(_pad_to(b1.reshape(1, mlp_dim), (1, Hp)))
        w1_l.append(_pad_to(w1.T, (Dp, Hp)).astype(jnp.bfloat16))
        w2_l.append(_pad_to(w2.T, (Hp, Dp)).astype(jnp.bfloat16))

    wh = jax.random.normal(next(ki), (num_classes, dim), jnp.float32) * std
    bh = jax.random.normal(next(ki), (num_classes,), jnp.float32) * std

    return {
        "embed_w": embed_w,
        # global constants: [embed bias, final affine alpha, beta, pad]
        "cvec": jnp.stack([embed_b, ones_d, zeros_d, zeros_d]),  # (4, Dp)
        "wt": jnp.stack(wt_l),      # (depth, Np, Np)  bf16
        "bt": jnp.stack(bt_l),      # (depth, Np, 1)   f32
        "vecd": jnp.stack(vecd_l),  # (depth, 8, Dp)   f32
        "b1": jnp.stack(b1_l),      # (depth, 1, Hp)   f32
        "w1": jnp.stack(w1_l),      # (depth, Dp, Hp)  bf16
        "w2": jnp.stack(w2_l),      # (depth, Hp, Dp)  bf16
        "wh": _pad_to(wh.T, (Dp, Cp)).astype(jnp.bfloat16),      # (Dp, Cp)
        "bh": _pad_to(bh.reshape(1, num_classes), (1, Cp)),      # (1, Cp)
    }


# -----------------------------------------------------------------------------
if __name__ == "__main__":
    B, IN_CH, IMG, PATCH = 2, 4, 16, 4
    DIM, DEPTH, MLP_DIM, NUM_CLASSES = 32, 2, 64, 10

    key = jax.random.PRNGKey(0)
    k_param, k_x = jax.random.split(key)

    params = init_params(
        k_param,
        in_channels=IN_CH, dim=DIM, num_classes=NUM_CLASSES,
        patch_size=PATCH, image_size=IMG, depth=DEPTH, mlp_dim=MLP_DIM,
    )
    x = jax.random.normal(k_x, (B, IN_CH, IMG, IMG), jnp.float32)

    out = resmlp_forward(x, params, patch_size=PATCH, num_classes=NUM_CLASSES)
    out = jax.block_until_ready(out)

    assert out.shape == (B, NUM_CLASSES)
    assert bool(jnp.all(jnp.isfinite(out)))
    # log_softmax rows should exponentiate-sum to ~1
    assert bool(jnp.allclose(jnp.sum(jnp.exp(out), axis=1), 1.0, atol=1e-3))
    print("KERNEL_OK")
</pallas_src>

<mosaic_0001>
module attributes {stable_mosaic.version = 11 : i64} {
  func.func @_resmlp_kernel(%arg0: i32, %arg1: i32, %arg2: memref<2x16x128xf32, #tpu.memory_space<vmem>>, %arg3: memref<128x128xbf16, #tpu.memory_space<vmem>>, %arg4: memref<4x128xf32, #tpu.memory_space<vmem>>, %arg5: memref<1x16x16xbf16, #tpu.memory_space<vmem>>, %arg6: memref<1x16x1xf32, #tpu.memory_space<vmem>>, %arg7: memref<1x8x128xf32, #tpu.memory_space<vmem>>, %arg8: memref<1x1x128xf32, #tpu.memory_space<vmem>>, %arg9: memref<1x128x128xbf16, #tpu.memory_space<vmem>>, %arg10: memref<1x128x128xbf16, #tpu.memory_space<vmem>>, %arg11: memref<128x128xbf16, #tpu.memory_space<vmem>>, %arg12: memref<1x128xf32, #tpu.memory_space<vmem>>, %arg13: memref<2x128xf32, #tpu.memory_space<vmem>>, %arg14: memref<2x16x128xf32, #tpu.memory_space<vmem>>) attributes {dimension_semantics = [#tpu.dimension_semantics<parallel>, #tpu.dimension_semantics<arbitrary>], iteration_bounds = array<i64: 1, 2>, scalar_prefetch = 0 : i64, scratch_operands = 1 : i64, tpu.core_type = #tpu.core_type<tc>, window_params = [{transform_indices = @transform_0, window_bounds = array<i64: 2, 16, 128>}, {pipeline_mode = #tpu.pipeline_mode<synchronous>, transform_indices = @transform_1, window_bounds = array<i64: 128, 128>}, {pipeline_mode = #tpu.pipeline_mode<synchronous>, transform_indices = @transform_2, window_bounds = array<i64: 4, 128>}, {transform_indices = @transform_3, window_bounds = array<i64: 1, 16, 16>}, {transform_indices = @transform_4, window_bounds = array<i64: 1, 16, 1>}, {transform_indices = @transform_5, window_bounds = array<i64: 1, 8, 128>}, {transform_indices = @transform_6, window_bounds = array<i64: 1, 1, 128>}, {transform_indices = @transform_7, window_bounds = array<i64: 1, 128, 128>}, {transform_indices = @transform_8, window_bounds = array<i64: 1, 128, 128>}, {pipeline_mode = #tpu.pipeline_mode<synchronous>, transform_indices = @transform_9, window_bounds = array<i64: 128, 128>}, {pipeline_mode = #tpu.pipeline_mode<synchronous>, transform_indices = @transform_10, window_bounds = array<i64: 1, 128>}, {transform_indices = @transform_11, window_bounds = array<i64: 2, 128>}]} {
    %c0_i32 = arith.constant 0 : i32
    %0 = arith.cmpi eq, %arg1, %c0_i32 : i32
    %1 = arith.extui %0 : i1 to i32
    %c0_i32_0 = arith.constant 0 : i32
    %2 = arith.cmpi ne, %1, %c0_i32_0 : i32
    scf.if %2 {
      %c0_55 = arith.constant 0 : index
      %c0_56 = arith.constant 0 : index
      %c0_57 = arith.constant 0 : index
      %109 = vector.load %arg2[%c0_55, %c0_56, %c0_57] : memref<2x16x128xf32, #tpu.memory_space<vmem>>, vector<2x16x128xf32>
      %110 = vector.shape_cast %109 : vector<2x16x128xf32> to vector<32x128xf32>
      %111 = arith.truncf %110 : vector<32x128xf32> to vector<32x128xbf16>
      %c0_58 = arith.constant 0 : index
      %c0_59 = arith.constant 0 : index
      %112 = vector.load %arg3[%c0_58, %c0_59] : memref<128x128xbf16, #tpu.memory_space<vmem>>, vector<128x128xbf16>
      %cst_60 = arith.constant dense<0.000000e+00> : vector<32x128xf32>
      %113 = tpu.matmul %111, %112, %cst_60 {dimension_numbers = #tpu.dot_dimension_numbers<[1], [0], [0], [1], [0, 0, 1, 1], [], []>} : vector<32x128xbf16>, vector<128x128xbf16>, vector<32x128xf32> -> vector<32x128xf32>
      %c0_61 = arith.constant 0 : index
      %c0_62 = arith.constant 0 : index
      %114 = vector.load %arg4[%c0_61, %c0_62] : memref<4x128xf32, #tpu.memory_space<vmem>>, vector<1x128xf32>
      %115 = vector.broadcast %114 : vector<1x128xf32> to vector<32x128xf32>
      %116 = arith.addf %113, %115 : vector<32x128xf32>
      %117 = vector.shape_cast %116 : vector<32x128xf32> to vector<2x16x128xf32>
      %c0_63 = arith.constant 0 : index
      %c0_64 = arith.constant 0 : index
      %c0_65 = arith.constant 0 : index
      %118 = vector.load %arg14[%c0_63, %c0_64, %c0_65] : memref<2x16x128xf32, #tpu.memory_space<vmem>>, vector<2x16x128xf32>
      tpu.vector_store %arg14[%c0_63, %c0_64, %c0_65], %117 {strides = array<i32>} : memref<2x16x128xf32, #tpu.memory_space<vmem>>, vector<2x16x128xf32>,
    } else {
    }
    %c0 = arith.constant 0 : index
    %c0_1 = arith.constant 0 : index
    %c0_2 = arith.constant 0 : index
    %3 = vector.load %arg7[%c0, %c0_1, %c0_2] : memref<1x8x128xf32, #tpu.memory_space<vmem>>, vector<1x1x128xf32>
    %4 = vector.shape_cast %3 : vector<1x1x128xf32> to vector<1x128xf32>
    %c0_3 = arith.constant 0 : index
    %c1 = arith.constant 1 : index
    %c0_4 = arith.constant 0 : index
    %5 = vector.load %arg7[%c0_3, %c1, %c0_4] : memref<1x8x128xf32, #tpu.memory_space<vmem>>, vector<1x1x128xf32>
    %6 = vector.shape_cast %5 : vector<1x1x128xf32> to vector<1x128xf32>
    %c0_5 = arith.constant 0 : index
    %c2 = arith.constant 2 : index
    %c0_6 = arith.constant 0 : index
    %7 = vector.load %arg7[%c0_5, %c2, %c0_6] : memref<1x8x128xf32, #tpu.memory_space<vmem>>, vector<1x1x128xf32>
    %8 = vector.shape_cast %7 : vector<1x1x128xf32> to vector<1x128xf32>
    %c0_7 = arith.constant 0 : index
    %c3 = arith.constant 3 : index
    %c0_8 = arith.constant 0 : index
    %9 = vector.load %arg7[%c0_7, %c3, %c0_8] : memref<1x8x128xf32, #tpu.memory_space<vmem>>, vector<1x1x128xf32>
    %10 = vector.shape_cast %9 : vector<1x1x128xf32> to vector<1x128xf32>
    %c0_9 = arith.constant 0 : index
    %c4 = arith.constant 4 : index
    %c0_10 = arith.constant 0 : index
    %11 = vector.load %arg7[%c0_9, %c4, %c0_10] : memref<1x8x128xf32, #tpu.memory_space<vmem>>, vector<1x1x128xf32>
    %12 = vector.shape_cast %11 : vector<1x1x128xf32> to vector<1x128xf32>
    %c0_11 = arith.constant 0 : index
    %c5 = arith.constant 5 : index
    %c0_12 = arith.constant 0 : index
    %13 = vector.load %arg7[%c0_11, %c5, %c0_12] : memref<1x8x128xf32, #tpu.memory_space<vmem>>, vector<1x1x128xf32>
    %14 = vector.shape_cast %13 : vector<1x1x128xf32> to vector<1x128xf32>
    %c0_13 = arith.constant 0 : index
    %c6 = arith.constant 6 : index
    %c0_14 = arith.constant 0 : index
    %15 = vector.load %arg7[%c0_13, %c6, %c0_14] : memref<1x8x128xf32, #tpu.memory_space<vmem>>, vector<1x1x128xf32>
    %16 = vector.shape_cast %15 : vector<1x1x128xf32> to vector<1x128xf32>
    %c0_15 = arith.constant 0 : index
    %c0_16 = arith.constant 0 : index
    %c0_17 = arith.constant 0 : index
    %17 = vector.load %arg14[%c0_15, %c0_16, %c0_17] : memref<2x16x128xf32, #tpu.memory_space<vmem>>, vector<2x16x128xf32>
    %18 = vector.shape_cast %4 : vector<1x128xf32> to vector<1x1x128xf32>
    %19 = vector.broadcast %18 : vector<1x1x128xf32> to vector<2x16x128xf32>
    %20 = arith.mulf %17, %19 : vector<2x16x128xf32>
    %21 = vector.shape_cast %6 : vector<1x128xf32> to vector<1x1x128xf32>
    %22 = vector.broadcast %21 : vector<1x1x128xf32> to vector<2x16x128xf32>
    %23 = arith.addf %20, %22 : vector<2x16x128xf32>
    %c0_18 = arith.constant 0 : index
    %c0_19 = arith.constant 0 : index
    %c0_20 = arith.constant 0 : index
    %24 = vector.load %arg5[%c0_18, %c0_19, %c0_20] : memref<1x16x16xbf16, #tpu.memory_space<vmem>>, vector<1x16x16xbf16>
    %25 = vector.shape_cast %24 : vector<1x16x16xbf16> to vector<16x16xbf16>
    %26 = vector.shape_cast %25 : vector<16x16xbf16> to vector<1x16x16xbf16>
    %27 = vector.broadcast %26 : vector<1x16x16xbf16> to vector<2x16x16xbf16>
    %28 = arith.truncf %23 : vector<2x16x128xf32> to vector<2x16x128xbf16>
    %cst = arith.constant dense<0.000000e+00> : vector<2x16x128xf32>
    %29 = tpu.matmul %27, %28, %cst {dimension_numbers = #tpu.dot_dimension_numbers<[2], [1], [1], [2], [0, 0, 0, 1, 1, 2], [0], [0]>} : vector<2x16x16xbf16>, vector<2x16x128xbf16>, vector<2x16x128xf32> -> vector<2x16x128xf32>
    %c0_21 = arith.constant 0 : index
    %c0_22 = arith.constant 0 : index
    %c0_23 = arith.constant 0 : index
    %30 = vector.load %arg6[%c0_21, %c0_22, %c0_23] : memref<1x16x1xf32, #tpu.memory_space<vmem>>, vector<1x16x1xf32>
    %31 = vector.shape_cast %30 : vector<1x16x1xf32> to vector<16x1xf32>
    %32 = vector.shape_cast %31 : vector<16x1xf32> to vector<1x16x1xf32>
    %33 = vector.broadcast %32 : vector<1x16x1xf32> to vector<2x16x128xf32>
    %34 = arith.addf %29, %33 : vector<2x16x128xf32>
    %35 = vector.shape_cast %14 : vector<1x128xf32> to vector<1x1x128xf32>
    %36 = vector.broadcast %35 : vector<1x1x128xf32> to vector<2x16x128xf32>
    %37 = arith.mulf %36, %34 : vector<2x16x128xf32>
    %38 = arith.addf %23, %37 : vector<2x16x128xf32>
    %39 = vector.shape_cast %8 : vector<1x128xf32> to vector<1x1x128xf32>
    %40 = vector.broadcast %39 : vector<1x1x128xf32> to vector<2x16x128xf32>
    %41 = arith.mulf %38, %40 : vector<2x16x128xf32>
    %42 = vector.shape_cast %10 : vector<1x128xf32> to vector<1x1x128xf32>
    %43 = vector.broadcast %42 : vector<1x1x128xf32> to vector<2x16x128xf32>
    %44 = arith.addf %41, %43 : vector<2x16x128xf32>
    %45 = vector.shape_cast %44 : vector<2x16x128xf32> to vector<32x128xf32>
    %46 = arith.truncf %45 : vector<32x128xf32> to vector<32x128xbf16>
    %c0_24 = arith.constant 0 : index
    %c0_25 = arith.constant 0 : index
    %c0_26 = arith.constant 0 : index
    %47 = vector.load %arg9[%c0_24, %c0_25, %c0_26] : memref<1x128x128xbf16, #tpu.memory_space<vmem>>, vector<1x128x128xbf16>
    %48 = vector.shape_cast %47 : vector<1x128x128xbf16> to vector<128x128xbf16>
    %cst_27 = arith.constant dense<0.000000e+00> : vector<32x128xf32>
    %49 = tpu.matmul %46, %48, %cst_27 {dimension_numbers = #tpu.dot_dimension_numbers<[1], [0], [0], [1], [0, 0, 1, 1], [], []>} : vector<32x128xbf16>, vector<128x128xbf16>, vector<32x128xf32> -> vector<32x128xf32>
    %c0_28 = arith.constant 0 : index
    %c0_29 = arith.constant 0 : index
    %c0_30 = arith.constant 0 : index
    %50 = vector.load %arg8[%c0_28, %c0_29, %c0_30] : memref<1x1x128xf32, #tpu.memory_space<vmem>>, vector<1x1x128xf32>
    %51 = vector.shape_cast %50 : vector<1x1x128xf32> to vector<1x128xf32>
    %52 = vector.broadcast %51 : vector<1x128xf32> to vector<32x128xf32>
    %53 = arith.addf %49, %52 : vector<32x128xf32>
    %cst_31 = arith.constant 5.000000e-01 : f32
    %54 = vector.broadcast %cst_31 : f32 to vector<32x128xf32>
    %55 = arith.mulf %54, %53 : vector<32x128xf32>
    %cst_32 = arith.constant 0.707106769 : f32
    %56 = vector.broadcast %cst_32 : f32 to vector<32x128xf32>
    %57 = arith.mulf %53, %56 : vector<32x128xf32>
    %cst_33 = arith.constant 0.000000e+00 : f32
    %58 = vector.broadcast %cst_33 : f32 to vector<32x128xf32>
    %59 = arith.cmpf oge, %57, %58 : vector<32x128xf32>
    %cst_34 = arith.constant 1.000000e+00 : f32
    %cst_35 = arith.constant -1.000000e+00 : f32
    %60 = vector.broadcast %cst_34 : f32 to vector<32x128xf32>
    %61 = vector.broadcast %cst_35 : f32 to vector<32x128xf32>
    %62 = arith.select %59, %60, %61 : vector<32x128xi1>, vector<32x128xf32>
    %63 = math.absf %57 : vector<32x128xf32>
    %cst_36 = arith.constant 0.327591091 : f32
    %64 = vector.broadcast %cst_36 : f32 to vector<32x128xf32>
    %65 = arith.mulf %64, %63 : vector<32x128xf32>
    %cst_37 = arith.constant 1.000000e+00 : f32
    %66 = vector.broadcast %cst_37 : f32 to vector<32x128xf32>
    %67 = arith.addf %66, %65 : vector<32x128xf32>
    %cst_38 = arith.constant 1.000000e+00 : f32
    %68 = vector.broadcast %cst_38 : f32 to vector<32x128xf32>
    %69 = arith.divf %68, %67 : vector<32x128xf32>
    %cst_39 = arith.constant 1.06140542 : f32
    %70 = vector.broadcast %cst_39 : f32 to vector<32x128xf32>
    %71 = arith.mulf %70, %69 : vector<32x128xf32>
    %cst_40 = arith.constant -1.45315206 : f32
    %72 = vector.broadcast %cst_40 : f32 to vector<32x128xf32>
    %73 = arith.addf %71, %72 : vector<32x128xf32>
    %74 = arith.mulf %73, %69 : vector<32x128xf32>
    %cst_41 = arith.constant 1.42141378 : f32
    %75 = vector.broadcast %cst_41 : f32 to vector<32x128xf32>
    %76 = arith.addf %74, %75 : vector<32x128xf32>
    %77 = arith.mulf %76, %69 : vector<32x128xf32>
    %cst_42 = arith.constant -0.284496725 : f32
    %78 = vector.broadcast %cst_42 : f32 to vector<32x128xf32>
    %79 = arith.addf %77, %78 : vector<32x128xf32>
    %80 = arith.mulf %79, %69 : vector<32x128xf32>
    %cst_43 = arith.constant 0.254829586 : f32
    %81 = vector.broadcast %cst_43 : f32 to vector<32x128xf32>
    %82 = arith.addf %80, %81 : vector<32x128xf32>
    %83 = arith.mulf %82, %69 : vector<32x128xf32>
    %cst_44 = arith.constant 0.000000e+00 : f32
    %84 = vector.broadcast %cst_44 : f32 to vector<32x128xf32>
    %85 = arith.subf %84, %63 : vector<32x128xf32>
    %86 = arith.mulf %85, %63 : vector<32x128xf32>
    %87 = math.exp %86 : vector<32x128xf32>
    %88 = arith.mulf %83, %87 : vector<32x128xf32>
    %cst_45 = arith.constant 1.000000e+00 : f32
    %89 = vector.broadcast %cst_45 : f32 to vector<32x128xf32>
    %90 = arith.subf %89, %88 : vector<32x128xf32>
    %91 = arith.mulf %62, %90 : vector<32x128xf32>
    %cst_46 = arith.constant 1.000000e+00 : f32
    %92 = vector.broadcast %cst_46 : f32 to vector<32x128xf32>
    %93 = arith.addf %92, %91 : vector<32x128xf32>
    %94 = arith.mulf %55, %93 : vector<32x128xf32>
    %95 = arith.truncf %94 : vector<32x128xf32> to vector<32x128xbf16>
    %c0_47 = arith.constant 0 : index
    %c0_48 = arith.constant 0 : index
    %c0_49 = arith.constant 0 : index
    %96 = vector.load %arg10[%c0_47, %c0_48, %c0_49] : memref<1x128x128xbf16, #tpu.memory_space<vmem>>, vector<1x128x128xbf16>
    %97 = vector.shape_cast %96 : vector<1x128x128xbf16> to vector<128x128xbf16>
    %cst_50 = arith.constant dense<0.000000e+00> : vector<32x128xf32>
    %98 = tpu.matmul %95, %97, %cst_50 {dimension_numbers = #tpu.dot_dimension_numbers<[1], [0], [0], [1], [0, 0, 1, 1], [], []>} : vector<32x128xbf16>, vector<128x128xbf16>, vector<32x128xf32> -> vector<32x128xf32>
    %99 = vector.broadcast %12 : vector<1x128xf32> to vector<32x128xf32>
    %100 = arith.addf %98, %99 : vector<32x128xf32>
    %101 = vector.broadcast %16 : vector<1x128xf32> to vector<32x128xf32>
    %102 = arith.mulf %101, %100 : vector<32x128xf32>
    %103 = vector.shape_cast %102 : vector<32x128xf32> to vector<2x16x128xf32>
    %104 = arith.addf %44, %103 : vector<2x16x128xf32>
    %c0_51 = arith.constant 0 : index
    %c0_52 = arith.constant 0 : index
    %c0_53 = arith.constant 0 : index
    %105 = vector.load %arg14[%c0_51, %c0_52, %c0_53] : memref<2x16x128xf32, #tpu.memory_space<vmem>>, vector<2x16x128xf32>
    tpu.vector_store %arg14[%c0_51, %c0_52, %c0_53], %104 {strides = array<i32>} : memref<2x16x128xf32, #tpu.memory_space<vmem>>, vector<2x16x128xf32>,
    %c1_i32 = arith.constant 1 : i32
    %106 = arith.cmpi eq, %arg1, %c1_i32 : i32
    %107 = arith.extui %106 : i1 to i32
    %c0_i32_54 = arith.constant 0 : i32
    %108 = arith.cmpi ne, %107, %c0_i32_54 : i32
    scf.if %108 {
      %cst_55 = arith.constant dense<0.000000e+00> : vector<2x128xf32>
      %109 = vector.multi_reduction <add>, %104, %cst_55 [1] : vector<2x16x128xf32> to vector<2x128xf32>
      %cst_56 = arith.constant 6.250000e-02 : f32
      %110 = vector.broadcast %cst_56 : f32 to vector<2x128xf32>
      %111 = arith.mulf %109, %110 : vector<2x128xf32>
      %c1_57 = arith.constant 1 : index
      %c0_58 = arith.constant 0 : index
      %112 = vector.load %arg4[%c1_57, %c0_58] : memref<4x128xf32, #tpu.memory_space<vmem>>, vector<1x128xf32>
      %113 = vector.broadcast %112 : vector<1x128xf32> to vector<2x128xf32>
      %114 = arith.mulf %111, %113 : vector<2x128xf32>
      %c2_59 = arith.constant 2 : index
      %c0_60 = arith.constant 0 : index
      %115 = vector.load %arg4[%c2_59, %c0_60] : memref<4x128xf32, #tpu.memory_space<vmem>>, vector<1x128xf32>
      %116 = vector.broadcast %115 : vector<1x128xf32> to vector<2x128xf32>
      %117 = arith.addf %114, %116 : vector<2x128xf32>
      %118 = arith.truncf %117 : vector<2x128xf32> to vector<2x128xbf16>
      %c0_61 = arith.constant 0 : index
      %c0_62 = arith.constant 0 : index
      %119 = vector.load %arg11[%c0_61, %c0_62] : memref<128x128xbf16, #tpu.memory_space<vmem>>, vector<128x128xbf16>
      %cst_63 = arith.constant dense<0.000000e+00> : vector<2x128xf32>
      %120 = tpu.matmul %118, %119, %cst_63 {dimension_numbers = #tpu.dot_dimension_numbers<[1], [0], [0], [1], [0, 0, 1, 1], [], []>} : vector<2x128xbf16>, vector<128x128xbf16>, vector<2x128xf32> -> vector<2x128xf32>
      %c0_64 = arith.constant 0 : index
      %c0_65 = arith.constant 0 : index
      %121 = vector.load %arg12[%c0_64, %c0_65] : memref<1x128xf32, #tpu.memory_space<vmem>>, vector<1x128xf32>
      %122 = vector.broadcast %121 : vector<1x128xf32> to vector<2x128xf32>
      %123 = arith.addf %120, %122 : vector<2x128xf32>
      %124 = tpu.iota {dimensions = array<i32: 1>} : vector<2x128xi32>
      %c10_i32 = arith.constant 10 : i32
      %125 = vector.broadcast %c10_i32 : i32 to vector<2x128xi32>
      %126 = arith.cmpi slt, %124, %125 : vector<2x128xi32>
      %cst_66 = arith.constant -1.000000e+30 : f32
      %127 = vector.broadcast %cst_66 : f32 to vector<2x128xf32>
      %128 = arith.select %126, %123, %127 : vector<2x128xi1>, vector<2x128xf32>
      %cst_67 = arith.constant dense<0xFF800000> : vector<2xf32>
      %129 = vector.multi_reduction <maximumf>, %128, %cst_67 [1] : vector<2x128xf32> to vector<2xf32>
      %130 = vector.shape_cast %129 : vector<2xf32> to vector<2x1xf32>
      %131 = vector.broadcast %130 : vector<2x1xf32> to vector<2x128xf32>
      %132 = arith.subf %128, %131 : vector<2x128xf32>
      %133 = math.exp %132 : vector<2x128xf32>
      %cst_68 = arith.constant dense<0.000000e+00> : vector<2xf32>
      %134 = vector.multi_reduction <add>, %133, %cst_68 [1] : vector<2x128xf32> to vector<2xf32>
      %135 = vector.shape_cast %134 : vector<2xf32> to vector<2x1xf32>
      %136 = math.log %135 : vector<2x1xf32>
      %137 = vector.broadcast %136 : vector<2x1xf32> to vector<2x128xf32>
      %138 = arith.subf %132, %137 : vector<2x128xf32>
      %c0_69 = arith.constant 0 : index
      %c0_70 = arith.constant 0 : index
      %139 = vector.load %arg13[%c0_69, %c0_70] : memref<2x128xf32, #tpu.memory_space<vmem>>, vector<2x128xf32>
      tpu.vector_store %arg13[%c0_69, %c0_70], %138 {strides = array<i32>} : memref<2x128xf32, #tpu.memory_space<vmem>>, vector<2x128xf32>,
    } else {
    }
    return
  }
  func.func @transform_0(%arg0: i32, %arg1: i32) -> (i32, i32, i32) {
    %c0_i32 = arith.constant 0 : i32
    %c0_i32_0 = arith.constant 0 : i32
    %c0_i32_1 = arith.constant 0 : i32
    return %arg0, %c0_i32, %c0_i32_0 : i32, i32, i32
  }
  func.func @transform_1(%arg0: i32, %arg1: i32) -> (i32, i32) {
    %c0_i32 = arith.constant 0 : i32
    %c0_i32_0 = arith.constant 0 : i32
    %c0_i32_1 = arith.constant 0 : i32
    return %c0_i32, %c0_i32_0 : i32, i32
  }
  func.func @transform_2(%arg0: i32, %arg1: i32) -> (i32, i32) {
    %c0_i32 = arith.constant 0 : i32
    %c0_i32_0 = arith.constant 0 : i32
    %c0_i32_1 = arith.constant 0 : i32
    return %c0_i32, %c0_i32_0 : i32, i32
  }
  func.func @transform_3(%arg0: i32, %arg1: i32) -> (i32, i32, i32) {
    %c0_i32 = arith.constant 0 : i32
    %c0_i32_0 = arith.constant 0 : i32
    %c0_i32_1 = arith.constant 0 : i32
    return %arg1, %c0_i32, %c0_i32_0 : i32, i32, i32
  }
  func.func @transform_4(%arg0: i32, %arg1: i32) -> (i32, i32, i32) {
    %c0_i32 = arith.constant 0 : i32
    %c0_i32_0 = arith.constant 0 : i32
    %c0_i32_1 = arith.constant 0 : i32
    return %arg1, %c0_i32, %c0_i32_0 : i32, i32, i32
  }
  func.func @transform_5(%arg0: i32, %arg1: i32) -> (i32, i32, i32) {
    %c0_i32 = arith.constant 0 : i32
    %c0_i32_0 = arith.constant 0 : i32
    %c0_i32_1 = arith.constant 0 : i32
    return %arg1, %c0_i32, %c0_i32_0 : i32, i32, i32
  }
  func.func @transform_6(%arg0: i32, %arg1: i32) -> (i32, i32, i32) {
    %c0_i32 = arith.constant 0 : i32
    %c0_i32_0 = arith.constant 0 : i32
    %c0_i32_1 = arith.constant 0 : i32
    return %arg1, %c0_i32, %c0_i32_0 : i32, i32, i32
  }
  func.func @transform_7(%arg0: i32, %arg1: i32) -> (i32, i32, i32) {
    %c0_i32 = arith.constant 0 : i32
    %c0_i32_0 = arith.constant 0 : i32
    %c0_i32_1 = arith.constant 0 : i32
    return %arg1, %c0_i32, %c0_i32_0 : i32, i32, i32
  }
  func.func @transform_8(%arg0: i32, %arg1: i32) -> (i32, i32, i32) {
    %c0_i32 = arith.constant 0 : i32
    %c0_i32_0 = arith.constant 0 : i32
    %c0_i32_1 = arith.constant 0 : i32
    return %arg1, %c0_i32, %c0_i32_0 : i32, i32, i32
  }
  func.func @transform_9(%arg0: i32, %arg1: i32) -> (i32, i32) {
    %c0_i32 = arith.constant 0 : i32
    %c0_i32_0 = arith.constant 0 : i32
    %c0_i32_1 = arith.constant 0 : i32
    return %c0_i32, %c0_i32_0 : i32, i32
  }
  func.func @transform_10(%arg0: i32, %arg1: i32) -> (i32, i32) {
    %c0_i32 = arith.constant 0 : i32
    %c0_i32_0 = arith.constant 0 : i32
    %c0_i32_1 = arith.constant 0 : i32
    return %c0_i32, %c0_i32_0 : i32, i32
  }
  func.func @transform_11(%arg0: i32, %arg1: i32) -> (i32, i32) {
    %c0_i32 = arith.constant 0 : i32
    %c0_i32_0 = arith.constant 0 : i32
    return %arg0, %c0_i32 : i32, i32
  }
}

</mosaic_0001>

<bundles_post_ra>
// kernel: resmlp_forward.1
= control target key start
LH: loop header
LB: loop body
LE: loop exit
PB: predicated region body
PF: predicated region fallthrough
CT: control target
= control target key end

     0   :  { %s2136_s0 = inlined_call_operand.vmem [shape: f32[2,16,128], index: 0, kind: input, shape index: {}]   ;;  %s2137_s1 = inlined_call_operand.vmem [shape: bf16[128,128], index: 1, kind: input, shape index: {}]   ;;  %s2138_s2 = inlined_call_operand.vmem [shape: f32[4,128], index: 2, kind: input, shape index: {}]   ;;  %s2139_s3 = inlined_call_operand.vmem [shape: bf16[2,16,16], index: 3, kind: input, shape index: {}]   ;;  %s2140_s4 = inlined_call_operand.vmem [shape: f32[2,16,1], index: 4, kind: input, shape index: {}]   ;;  %s2141_s5 = inlined_call_operand.vmem [shape: f32[2,8,128], index: 5, kind: input, shape index: {}]   ;;  %s2142_s6 = inlined_call_operand.vmem [shape: f32[2,1,128], index: 6, kind: input, shape index: {}]   ;;  %s2143_s7 = inlined_call_operand.vmem [shape: bf16[2,128,128], index: 7, kind: input, shape index: {}]   ;;  %s2144_s8 = inlined_call_operand.vmem [shape: bf16[2,128,128], index: 8, kind: input, shape index: {}]   ;;  %s2145_s9 = inlined_call_operand.vmem [shape: bf16[128,128], index: 9, kind: input, shape index: {}]   ;;  %s2146_s10 = inlined_call_operand.vmem [shape: f32[1,128], index: 10, kind: input, shape index: {}]   ;;  %s2147_s11 = inlined_call_operand.hbm [shape: f32[2,128], index: 11, kind: output, shape index: {}]  }
   0x1   :  { %2150 = sst [smem:[#allocation8_spill]] %s2139_s3 }
   0x2   :  { %2151 = sst [smem:[#allocation9_spill]] %s2147_s11 }
   0x3   :  { %16 = vsyncpa [#allocation4], 0  ;;  %s1889_s17 = smov 0   ;;  %s1891_s18 = smov 0  }
   0x4   :  { %s1893_s19 = smov 0  }
   0x5 LB: > { %2152 = sst [smem:[#allocation6_spill]] %s1816_s18  ;;  %s31_s21 = sadd.s32 1, %s1816_s18  ;;  %s1820_s19 = sphi %s1893_s19, %s22_s19   ;;  %s1816_s18 = sphi %s1891_s18, %s2160_s18   ;;  %s1812_s17 = sphi %s1889_s17, %s2159_s17  }
   0x6   : > { %p32_p0 = scmp.ge.s32.totalorder %s31_s21, 2  ;;  %p1475_p1 = scmp.ge.s32.totalorder %s1820_s19, 1 }
   0x7   : > { %p409_p2 = scmp.lt.s32.totalorder %s1820_s19, 3 }
   0x8   : > { %s2162_s21 = smov (%p32_p0, %s31_s21), 0 }
   0x9   : > { %2153 = sst [smem:[#allocation7_spill]] %s2162_s21  ;;  %p410_p3 = pnand %p1475_p1, %p409_p2 }
   0xa   : > { %p479_p4 = scmp.lt.s32.totalorder (!%p410_p3), %s1812_s17, 1  ;;  %s2154_s3 = sld [smem:[#allocation8_spill]] (!%p410_p3) }
   0xb   : > { %413 = sbr.rel (%p410_p3) target bundleno = 1592 (0x638), region = 64  ;;  %p1485_p5 = scmp.ne.s32.totalorder (!%p410_p3), %s1812_s17, 0 }
  0x12   : > { %s1912_s22 = scalar_select %p479_p4, %s1812_s17, 1 }
  0x13   : > { %510 = sbr.rel (%p1485_p5) target bundleno = 270 (0x10e), region = 68  ;;  %v1714_v0 = vld [vmem:[%s2137_s1] sm:$0xff] (!%p1485_p5)   ;;  %v1715_v1 = vld [vmem:[%s2137_s1 + $0x8] sm:$0xff] (!%p1485_p5)   ;;  %v1716_v2 = vld [vmem:[%s2137_s1 + $0x10] sm:$0xff] (!%p1485_p5)  }
  0x14   : > { %s1538_s23 = sshll.u32 %s1912_s22, 3  ;;  %s1539_s24 = sshll.u32 %s1912_s22, 4  ;;  %1585 = vmatprep.subr.bf16.mxu0 (!%p1485_p5), %v1714_v0  ;;  %v1717_v3 = vld [vmem:[%s2137_s1 + $0x18] sm:$0xff] (!%p1485_p5)   ;;  %v511_v4 = vld [vmem:[%s2136_s0] sm:$0xff] (!%p1485_p5)  ;;  %v512_v5 = vld [vmem:[%s2136_s0 + $0x8] sm:$0xff] (!%p1485_p5) }
  0x15   : > { %s1919_s27 = scalar_lea.vmem %s2154_s3, %s1538_s23  ;;  %s1924_s30 = scalar_lea.vmem %s2140_s4, %s1539_s24  ;;  %1586 = vmatpush3.bf16.msra.mxu0 (!%p1485_p5), %v1714_v0  ;;  %v515_v6 = vpack.c.bf16 (!%p1485_p5), %v512_v5, %v511_v4  ;;  %v1718_v7 = vld [vmem:[%s2137_s1 + $0x20] sm:$0xff] (!%p1485_p5)   ;;  %v1719_v8 = vld [vmem:[%s2137_s1 + $0x28] sm:$0xff] (!%p1485_p5)   ;;  %v1720_v9 = vld [vmem:[%s2137_s1 + $0x30] sm:$0xff] (!%p1485_p5)  }
  0x16   : > { %s1929_s14 = scalar_lea.vmem %s2141_s5, %s1538_s23  ;;  %s495_s20 = scalar_lea.vmem %s2142_s6, %s1912_s22  ;;  %1587 = vmatprep.subr.bf16.mxu0 (!%p1485_p5), %v1715_v1  ;;  %v1721_v10 = vld [vmem:[%s2137_s1 + $0x38] sm:$0xff] (!%p1485_p5)   ;;  %v513_v11 = vld [vmem:[%s2136_s0 + $0x10] sm:$0xff] (!%p1485_p5)  ;;  %v1486_v14 = vld [vmem:[%s2138_s2] ss:$0 sm:$0xff] (!%p1485_p5) }
  0x17   : > { %s1540_s21 = sshll.u32 %s1912_s22, 6  ;;  %1601 = vmatprep.mubr.bf16.mxu0 (!%p1485_p5), %v515_v6  ;;  %v514_v12 = vld [vmem:[%s2136_s0 + $0x18] sm:$0xff] (!%p1485_p5) }
  0x18   : > { %s1939_s25 = scalar_lea.vmem %s2143_s7, %s1540_s21  ;;  %s1944_s24 = scalar_lea.vmem %s2144_s8, %s1540_s21  ;;  %v516_v13 = vpack.c.bf16 (!%p1485_p5), %v514_v12, %v513_v11 }
  0x19   : > { %1588 = vmatpush3.bf16.msra.mxu0 (!%p1485_p5), %v1715_v1 }
  0x1a   : > { %1589 = vmatprep.subr.bf16.mxu0 %v1716_v2 }
  0x1d   : > { %1590 = vmatpush3.bf16.msra.mxu0 %v1716_v2 }
  0x1e   : > { %1591 = vmatprep.subr.bf16.mxu0 %v1717_v3 }
  0x21   : > { %1592 = vmatpush3.bf16.msra.mxu0 %v1717_v3 }
  0x22   : > { %1593 = vmatprep.subr.bf16.mxu0 %v1718_v7 }
  0x25   : > { %1594 = vmatpush3.bf16.msra.mxu0 %v1718_v7 }
  0x26   : > { %1595 = vmatprep.subr.bf16.mxu0 %v1719_v8 }
  0x29   : > { %1596 = vmatpush3.bf16.msra.mxu0 %v1719_v8 }
  0x2a   : > { %1597 = vmatprep.subr.bf16.mxu0 %v1720_v9 }
  0x2d   : > { %1598 = vmatpush3.bf16.msra.mxu0 %v1720_v9 }
  0x2e   : > { %1599 = vmatprep.subr.bf16.mxu0 %v1721_v10 }
  0x31   : > { %1600 = vmatpush3.bf16.msra.mxu0 %v1721_v10 }
  0x34   : > { %1602 = vmatmul.mubr.bf16.vlgmr.msra.gmra.mrb[0].mxu0 %v516_v13 }
 0x107   : > { %v1603_v15 = vpop.f32.mrb[0].mxu0 }
 0x108   : > { %v629_v16 = vadd.f32 %v1603_v15, %v1486_v14  ;;  %v620_v17 = vpop.f32.mrb[1].mxu0 }
 0x109   : > { %v621_v18 = vadd.f32 %v1486_v14, %v620_v17  ;;  %v1604_v19 = vpop.f32.mrb[2].mxu0 }
 0x10a   : > { %637 = vst [vmem:[#allocation2 + $0x10] sm:$0xff] %v629_v16  ;;  %v632_v20 = vadd.f32 %v1604_v19, %v1486_v14  ;;  %v623_v21 = vpop.f32.mrb[3].mxu0 }
 0x10b   : > { %635 = vst [vmem:[#allocation2] sm:$0xff] %v621_v18  ;;  %v624_v22 = vadd.f32 %v1486_v14, %v623_v21 }
 0x10c   : > { %638 = vst [vmem:[#allocation2 + $0x18] sm:$0xff] %v632_v20 }
 0x10d   : > { %636 = vst [vmem:[#allocation2 + $0x8] sm:$0xff] %v624_v22 }
 0x10e PF: > { %v1495_v23 = vld [vmem:[%s1929_s14] ss:$0 sm:$0xff]  ;;  %v1496_v24 = vld [vmem:[%s1929_s14 + $0x1] ss:$0 sm:$0xff]  ;;  %v1822_v26 = vmov 0.0   ;;  %vm1823_vm0 = vmmov 0  }
 0x10f   : > { %1605 = vmatprep.subr.bf16.mxu0 %v1822_v26  ;;  %1611 = vmatprep.subr.bf16.mxu1 %v1822_v26  ;;  %v1824_v35 = vmov 0   ;;  %v670_v36 = vld [vmem:[%s1924_s30] sm:$0xff]  ;;  %v671_v43 = vld [vmem:[%s1924_s30 + $0x8] sm:$0xff]  ;;  %vm687_vm1 = vcmask 130048   ;;  %v1726_v46 = vld [vmem:[%s1939_s25 + $0x10] sm:$0xff]   ;;  %p1522_p6 = scmp.ne.s32.totalorder %s1812_s17, 1 }
 0x110   : > { %1607 = vmatprep.mubr.msk.bf16.mxu0 %vm1823_vm0, %v1822_v26  ;;  %1613 = vmatprep.mubr.msk.bf16.mxu1 %vm1823_vm0, %v1822_v26  ;;  %v1724_v40 = vld [vmem:[%s1939_s25] sm:$0xff]   ;;  %v1725_v45 = vld [vmem:[%s1939_s25 + $0x8] sm:$0xff]   ;;  %v1727_v47 = vld [vmem:[%s1939_s25 + $0x18] sm:$0xff]   ;;  %vm1827_vm6 = vmmov (!%p1522_p6), 0   ;;  %vm1230_vm7 = vcmask (!%p1522_p6), 1041409   ;;  %vm1326_vm9 = vcmask (!%p1522_p6), 1041408  }
 0x111   : > { %v648_v29 = vld [vmem:[#allocation2 + $0x10] sm:$0xff]  ;;  %1722 = vset.pattern.permute.xlu0 %v1824_v35  ;;  %v1723_v44 = vld [vmem:[%s1919_s27] sm:$0xff]   ;;  %v1729_v49 = vld [vmem:[%s1939_s25 + $0x28] sm:$0xff]  }
 0x112   : > { %v646_v25 = vld [vmem:[#allocation2] sm:$0xff]  ;;  %v656_v32 = vmul.f32 %v1495_v23, %v648_v29  ;;  %674 = vperm.xlu0 %1722, %v670_v36   ;;  %v1730_v50 = vld [vmem:[%s1939_s25 + $0x30] sm:$0xff]   ;;  %v1731_v51 = vld [vmem:[%s1939_s25 + $0x38] sm:$0xff]  }
 0x113   : > { %v654_v28 = vmul.f32 %v1495_v23, %v646_v25  ;;  %v649_v30 = vld [vmem:[#allocation2 + $0x18] sm:$0xff]  ;;  %v1728_v48 = vld [vmem:[%s1939_s25 + $0x20] sm:$0xff]   ;;  %v1734_v25 = vld [vmem:[%s1944_s24 + $0x10] sm:$0xff]  }
 0x114   : > { %v647_v27 = vld [vmem:[#allocation2 + $0x8] sm:$0xff]  ;;  %v657_v33 = vmul.f32 %v1495_v23, %v649_v30  ;;  %v664_v38 = vadd.f32 %v1496_v24, %v656_v32  ;;  %v1500_v54 = vld [vmem:[%s1929_s14 + $0x5] ss:$0 sm:$0xff]  ;;  %v1501_v5 = vld [vmem:[%s1929_s14 + $0x2] ss:$0 sm:$0xff] }
 0x115   : > { %v655_v31 = vmul.f32 %v1495_v23, %v647_v27  ;;  %v662_v34 = vadd.f32 %v1496_v24, %v654_v28  ;;  %v1502_v14 = vld [vmem:[%s1929_s14 + $0x3] ss:$0 sm:$0xff]  ;;  %v1735_v26 = vld [vmem:[%s1944_s24 + $0x18] sm:$0xff]   ;;  %v1737_v28 = vld [vmem:[%s1944_s24 + $0x28] sm:$0xff]  }
 0x116   : > { %v665_v39 = vadd.f32 %v1496_v24, %v657_v33  ;;  %679 = vperm.xlu0 %1722, %v671_v43   ;;  %v1732_v23 = vld [vmem:[%s1944_s24] sm:$0xff]   ;;  %v1738_v29 = vld [vmem:[%s1944_s24 + $0x30] sm:$0xff]   ;;  %v1739_v30 = vld [vmem:[%s1944_s24 + $0x38] sm:$0xff]  }
 0x117   : > { %v663_v37 = vadd.f32 %v1496_v24, %v655_v31  ;;  %v1733_v24 = vld [vmem:[%s1944_s24 + $0x8] sm:$0xff]   ;;  %v1736_v27 = vld [vmem:[%s1944_s24 + $0x20] sm:$0xff]  }
 0x118   : > { %v669_v42 = vpack.c.bf16 %v665_v39, %v664_v38  ;;  %v1503_v31 = vld [vmem:[%s495_s20] ss:$0 sm:$0xff] }
 0x119   : > { %v668_v41 = vpack.c.bf16 %v663_v37, %v662_v34 }
 0x11a   : > { %1612 = vmatpush3.bf16.msra.mxu1 %v669_v42 }
 0x11b   : > { %1606 = vmatpush3.bf16.msra.mxu0 %v668_v41  ;;  %1637 = vmatprep.subr.bf16.mxu1 %v1732_v23 }
 0x11c   : > { %1617 = vmatprep.subr.bf16.mxu0 %v1724_v40 }
 0x11d   : > { %1614 = vmatmul.mubr.msk.bf16.vlgmr.msra.gmra.mrb[0].mxu1 %vm687_vm1, %v1723_v44 }
 0x11e   : > { %1608 = vmatmul.mubr.msk.bf16.vlgmr.msra.gmra.mrb[0].mxu0 %vm687_vm1, %v1723_v44  ;;  %1638 = vmatpush3.bf16.msra.mxu1 %v1732_v23 }
 0x11f   : > { %1618 = vmatpush3.bf16.msra.mxu0 %v1724_v40  ;;  %1639 = vmatprep.subr.bf16.mxu1 %v1733_v24 }
 0x120   : > { %1619 = vmatprep.subr.bf16.mxu0 %v1725_v45 }
 0x122   : > { %1640 = vmatpush3.bf16.msra.mxu1 %v1733_v24 }
 0x123   : > { %1620 = vmatpush3.bf16.msra.mxu0 %v1725_v45  ;;  %1641 = vmatprep.subr.bf16.mxu1 %v1734_v25 }
 0x124   : > { %1621 = vmatprep.subr.bf16.mxu0 %v1726_v46 }
 0x126   : > { %1642 = vmatpush3.bf16.msra.mxu1 %v1734_v25 }
 0x127   : > { %1622 = vmatpush3.bf16.msra.mxu0 %v1726_v46  ;;  %1643 = vmatprep.subr.bf16.mxu1 %v1735_v26 }
 0x128   : > { %1623 = vmatprep.subr.bf16.mxu0 %v1727_v47 }
 0x12a   : > { %1644 = vmatpush3.bf16.msra.mxu1 %v1735_v26 }
 0x12b   : > { %1624 = vmatpush3.bf16.msra.mxu0 %v1727_v47  ;;  %1645 = vmatprep.subr.bf16.mxu1 %v1736_v27 }
 0x12c   : > { %1625 = vmatprep.subr.bf16.mxu0 %v1728_v48 }
 0x12e   : > { %1646 = vmatpush3.bf16.msra.mxu1 %v1736_v27 }
 0x12f   : > { %1626 = vmatpush3.bf16.msra.mxu0 %v1728_v48  ;;  %1647 = vmatprep.subr.bf16.mxu1 %v1737_v28 }
 0x130   : > { %1627 = vmatprep.subr.bf16.mxu0 %v1729_v49 }
 0x132   : > { %1648 = vmatpush3.bf16.msra.mxu1 %v1737_v28 }
 0x133   : > { %1628 = vmatpush3.bf16.msra.mxu0 %v1729_v49  ;;  %1649 = vmatprep.subr.bf16.mxu1 %v1738_v29 }
 0x134   : > { %1629 = vmatprep.subr.bf16.mxu0 %v1730_v50 }
 0x136   : > { %1650 = vmatpush3.bf16.msra.mxu1 %v1738_v29 }
 0x137   : > { %1630 = vmatpush3.bf16.msra.mxu0 %v1730_v50  ;;  %1651 = vmatprep.subr.bf16.mxu1 %v1739_v30 }
 0x138   : > { %1631 = vmatprep.subr.bf16.mxu0 %v1731_v51 }
 0x13a   : > { %1652 = vmatpush3.bf16.msra.mxu1 %v1739_v30 }
 0x13b   : > { %1632 = vmatpush3.bf16.msra.mxu0 %v1731_v51 }
 0x191   : > { %v675_v52 = vpop.permute.xlu0 %674 }
 0x195   : > { %v680_v53 = vpop.permute.xlu0 %679 }
 0x1f0   : > { %v766_v56 = vpop.f32.mrb[0].mxu1 }
 0x1f1   : > { %v725_v55 = vpop.f32.mrb[0].mxu0  ;;  %v767_v58 = vadd.f32 %v766_v56, %v675_v52  ;;  %v1615_v60 = vpop.f32.mrb[1].mxu1 }
 0x1f2   : > { %v726_v57 = vadd.f32 %v725_v55, %v675_v52  ;;  %v1609_v59 = vpop.f32.mrb[1].mxu0  ;;  %v769_v62 = vpop.f32.mrb[2].mxu1 }
 0x1f3   : > { %v728_v61 = vpop.f32.mrb[2].mxu0  ;;  %v779_v0 = vmul.f32 %v1500_v54, %v767_v58  ;;  %v770_v2 = vadd.f32 %v769_v62, %v680_v53  ;;  %v1616_v4 = vpop.f32.mrb[3].mxu1 }
 0x1f4   : > { %v777_v63 = vmul.f32 %v1500_v54, %v726_v57  ;;  %v729_v1 = vadd.f32 %v728_v61, %v680_v53  ;;  %v1610_v3 = vpop.f32.mrb[3].mxu0 }
 0x1f5   : > { %v783_v7 = vadd.f32 %v779_v0, %v664_v38  ;;  %v780_v9 = vmul.f32 %v1500_v54, %v770_v2 }
 0x1f6   : > { %v781_v6 = vadd.f32 %v777_v63, %v662_v34  ;;  %v778_v8 = vmul.f32 %v1500_v54, %v729_v1 }
 0x1f7   : > { %v791_v11 = vmul.f32 %v1501_v5, %v783_v7  ;;  %v784_v13 = vadd.f32 %v780_v9, %v665_v39 }
 0x1f8   : > { %v789_v10 = vmul.f32 %v1501_v5, %v781_v6  ;;  %v782_v12 = vadd.f32 %v778_v8, %v663_v37 }
 0x1f9   : > { %v792_v16 = vmul.f32 %v1501_v5, %v784_v13  ;;  %v2002_v17 = vadd.f32 %v1502_v14, %v791_v11 }
 0x1fa   : > { %v790_v15 = vmul.f32 %v1501_v5, %v782_v12  ;;  %v2006_v19 = vadd.f32 %v1502_v14, %v789_v10 }
 0x1fb   : > { %v2004_v18 = vadd.f32 %v1502_v14, %v792_v16 }
 0x1fc   : > { %v2008_v20 = vadd.f32 %v1502_v14, %v790_v15 }
 0x1fd   : > { %v802_v22 = vpack.c.bf16 %v2004_v18, %v2002_v17 }
 0x1fe   : > { %v801_v21 = vpack.c.bf16 %v2008_v20, %v2006_v19 }
 0x200   : > { %1633 = vmatprep.mubr.bf16.mxu0 %v801_v21 }
 0x201   : > { %1634 = vmatmul.mubr.bf16.vlgmr.msra.gmra.mrb[4].mxu0 %v802_v22 }
 0x2d4   : > { %v1635_v32 = vpop.f32.mrb[4].mxu0 }
 0x2d5   : > { %v2027_v33 = vadd.f32 %v1635_v32, %v1503_v31  ;;  %v908_v34 = vpop.f32.mrb[5].mxu0 }
 0x2d6   : > { %v2029_v35 = vadd.f32 %v1503_v31, %v908_v34  ;;  %v1636_v36 = vpop.f32.mrb[6].mxu0 }
 0x2d7   : > { %v2032_v37 = vmul.f32 0.70710677, %v2027_v33  ;;  %v2034_v38 = vadd.f32 %v1636_v36, %v1503_v31  ;;  %v911_v39 = vpop.f32.mrb[7].mxu0 }
 0x2d8   : > { %v2037_v40 = vmul.f32 0.70710677, %v2029_v35  ;;  %v2043_v43 = vadd.f32 %v1503_v31, %v911_v39 }
 0x2d9   : > { %v941_v41 = vand.u32 2147483647, %v2032_v37  ;;  %v2041_v42 = vmul.f32 0.70710677, %v2034_v38  ;;  %vm933_vm2 = vcmp.ge.f32.partialorder %v2032_v37, 0.0 }
 0x2da   : > { %v939_v44 = vand.u32 2147483647, %v2037_v40  ;;  %v2048_v49 = vmul.f32 0.70710677, %v2043_v43  ;;  %vm931_vm3 = vcmp.ge.f32.partialorder %v2037_v40, 0.0 }
 0x2db   : > { %v945_v45 = vmul.f32 0.3275911, %v941_v41  ;;  %v942_v47 = vand.u32 2147483647, %v2041_v42  ;;  %v997_v56 = vsub.f32 0.0, %v941_v41  ;;  %vm934_vm4 = vcmp.ge.f32.partialorder %v2041_v42, 0.0 }
 0x2dc   : > { %v943_v46 = vmul.f32 0.3275911, %v939_v44  ;;  %v940_v52 = vand.u32 2147483647, %v2048_v49  ;;  %v995_v57 = vsub.f32 0.0, %v939_v44  ;;  %vm932_vm5 = vcmp.ge.f32.partialorder %v2048_v49, 0.0 }
 0x2dd   : > { %v949_v48 = vadd.f32 1.0, %v945_v45  ;;  %v946_v51 = vmul.f32 0.3275911, %v942_v47  ;;  %v1001_v59 = vmul.f32 %v997_v56, %v941_v41  ;;  %v998_v60 = vsub.f32 0.0, %v942_v47 }
 0x2de   : > { %v947_v50 = vadd.f32 1.0, %v943_v46  ;;  %v944_v54 = vmul.f32 0.3275911, %v940_v52  ;;  %v999_v63 = vmul.f32 %v995_v57, %v939_v44  ;;  %v996_v1 = vsub.f32 0.0, %v940_v52 }
 0x2df   : > { %1740 = vrcp.f32 %v949_v48  ;;  %v950_v53 = vadd.f32 1.0, %v946_v51  ;;  %v1007_v4 = vmul.f32 1.442695, %v1001_v59  ;;  %v1002_v6 = vmul.f32 %v998_v60, %v942_v47 }
 0x2e0   : > { %1742 = vrcp.f32 %v947_v50  ;;  %v948_v55 = vadd.f32 1.0, %v944_v54  ;;  %v1003_v8 = vmul.f32 1.442695, %v999_v63  ;;  %v1000_v12 = vmul.f32 %v996_v1, %v940_v52 }
 0x2e1   : > { %1744 = vrcp.f32 %v950_v53  ;;  %v1009_v21 = vmul.f32 1.442695, %v1002_v6  ;;  %v1825_v63 = vmov -1.0   ;;  %v926_v42 = vmul.f32 0.5, %v2034_v38 }
 0x2e2   : > { %1746 = vrcp.f32 %v948_v55  ;;  %v1005_v26 = vmul.f32 1.442695, %v1000_v12  ;;  %v935_v37 = vsel %vm931_vm3, 1.0, %v1825_v63  ;;  %v936_v12 = vsel %vm932_vm5, 1.0, %v1825_v63 }
 0x2e3   : > { %1748 = vpow2.f32 %v1007_v4  ;;  %v924_v49 = vmul.f32 0.5, %v2043_v43 }
 0x2e4   : > { %1750 = vpow2.f32 %v1003_v8  ;;  %v938_v8 = vsel %vm934_vm4, 1.0, %v1825_v63 }
 0x2e5   : > { %1752 = vpow2.f32 %v1009_v21 }
 0x2e6   : > { %1754 = vpow2.f32 %v1005_v26 }
 0x2e9   : > { %v1741_v58 = vpop.eup %1740 }
 0x2ea   : > { %v1743_v61 = vpop.eup %1742  ;;  %v961_v62 = vmul.f32 1.0614054, %v1741_v58 }
 0x2eb   : > { %v959_v0 = vmul.f32 1.0614054, %v1743_v61  ;;  %v1745_v3 = vpop.eup %1744 }
 0x2ec   : > { %v965_v2 = vadd.f32 -1.4531521, %v961_v62  ;;  %v962_v9 = vmul.f32 1.0614054, %v1745_v3  ;;  %v1747_v10 = vpop.eup %1746 }
 0x2ed   : > { %v963_v5 = vadd.f32 -1.4531521, %v959_v0  ;;  %v960_v15 = vmul.f32 1.0614054, %v1747_v10  ;;  %v1749_v50 = vpop.eup %1748  ;;  %v937_v0 = vsel %vm933_vm2, 1.0, %v1825_v63 }
 0x2ee   : > { %v969_v7 = vmul.f32 %v1741_v58, %v965_v2  ;;  %v966_v14 = vadd.f32 -1.4531521, %v962_v9  ;;  %v1751_v52 = vpop.eup %1750 }
 0x2ef   : > { %v967_v11 = vmul.f32 %v1743_v61, %v963_v5  ;;  %v964_v24 = vadd.f32 -1.4531521, %v960_v15  ;;  %v1753_v62 = vpop.eup %1752  ;;  %v923_v15 = vmul.f32 0.5, %v2029_v35 }
 0x2f0   : > { %v973_v13 = vadd.f32 1.4214138, %v969_v7  ;;  %v970_v23 = vmul.f32 %v1745_v3, %v966_v14  ;;  %v1755_v4 = vpop.eup %1754 }
 0x2f1   : > { %v971_v16 = vadd.f32 1.4214138, %v967_v11  ;;  %v968_v29 = vmul.f32 %v1747_v10, %v964_v24  ;;  %v925_v11 = vmul.f32 0.5, %v2027_v33  ;;  %v1512_v33 = vld [vmem:[%s1929_s14 + $0x4] ss:$0 sm:$0xff] }
 0x2f2   : > { %v977_v22 = vmul.f32 %v1741_v58, %v973_v13  ;;  %v974_v28 = vadd.f32 1.4214138, %v970_v23 }
 0x2f3   : > { %v975_v25 = vmul.f32 %v1743_v61, %v971_v16  ;;  %v972_v34 = vadd.f32 1.4214138, %v968_v29 }
 0x2f4   : > { %v981_v27 = vadd.f32 -0.28449672, %v977_v22  ;;  %v978_v32 = vmul.f32 %v1745_v3, %v974_v28 }
 0x2f5   : > { %v979_v30 = vadd.f32 -0.28449672, %v975_v25  ;;  %v976_v44 = vmul.f32 %v1747_v10, %v972_v34 }
 0x2f6   : > { %v985_v31 = vmul.f32 %v1741_v58, %v981_v27  ;;  %v982_v41 = vadd.f32 -0.28449672, %v978_v32  ;;  %v1521_v27 = vld [vmem:[%s1929_s14 + $0x6] ss:$0 sm:$0xff] }
 0x2f7   : > { %v983_v36 = vmul.f32 %v1743_v61, %v979_v30  ;;  %v980_v48 = vadd.f32 -0.28449672, %v976_v44 }
 0x2f8   : > { %v989_v39 = vadd.f32 0.2548296, %v985_v31  ;;  %v986_v47 = vmul.f32 %v1745_v3, %v982_v41 }
 0x2f9   : > { %v987_v45 = vadd.f32 0.2548296, %v983_v36  ;;  %v984_v55 = vmul.f32 %v1747_v10, %v980_v48  ;;  %v1756_v48 = vld [vmem:[%s2145_s9] sm:$0xff] (!%p1522_p6)  }
 0x2fa   : > { %v993_v46 = vmul.f32 %v1741_v58, %v989_v39  ;;  %v990_v54 = vadd.f32 0.2548296, %v986_v47 }
 0x2fb   : > { %v991_v51 = vmul.f32 %v1743_v61, %v987_v45  ;;  %v988_v60 = vadd.f32 0.2548296, %v984_v55 }
 0x2fc   : > { %v1013_v53 = vmul.f32 %v1749_v50, %v993_v46  ;;  %v994_v59 = vmul.f32 %v1745_v3, %v990_v54  ;;  %v1758_v54 = vld [vmem:[%s2145_s9 + $0x10] sm:$0xff] (!%p1522_p6)  }
 0x2fd   : > { %v1011_v56 = vmul.f32 %v1751_v52, %v991_v51  ;;  %v992_v2 = vmul.f32 %v1747_v10, %v988_v60  ;;  %v1826_v51 = vmov (!%p1522_p6), 0.0   ;;  %v1759_v60 = vld [vmem:[%s2145_s9 + $0x18] sm:$0xff] (!%p1522_p6)  }
 0x2fe   : > { %v1017_v57 = vsub.f32 1.0, %v1013_v53  ;;  %v1014_v61 = vmul.f32 %v1753_v62, %v994_v59  ;;  %1657 = vmatprep.subr.bf16.mxu0 (!%p1522_p6), %v1826_v51  ;;  %1673 = vmatprep.mubr.msk.bf16.mxu0 (!%p1522_p6), %vm1827_vm6, %v1826_v51 }
 0x2ff   : > { %v1015_v58 = vsub.f32 1.0, %v1011_v56  ;;  %v1012_v7 = vmul.f32 %v1755_v4, %v992_v2  ;;  %1658 = vmatpush3.bf16.msra.mxu0 (!%p1522_p6), %v1756_v48  ;;  %v1523_v2 = vld [vmem:[%s2138_s2 + $0x1] ss:$0 sm:$0xff] (!%p1522_p6) }
 0x300   : > { %v1021_v1 = vmul.f32 %v1017_v57, %v937_v0  ;;  %v1018_v6 = vsub.f32 1.0, %v1014_v61  ;;  %1659 = vmatprep.subr.bf16.mxu0 (!%p1522_p6), %v1826_v51 }
 0x301   : > { %v1019_v5 = vmul.f32 %v1015_v58, %v935_v37  ;;  %v1016_v9 = vsub.f32 1.0, %v1012_v7  ;;  %v1761_v7 = vld [vmem:[%s2145_s9 + $0x28] sm:$0xff] (!%p1522_p6)  }
 0x302   : > { %v1025_v40 = vadd.f32 1.0, %v1021_v1  ;;  %v1022_v3 = vmul.f32 %v1018_v6, %v938_v8  ;;  %v1760_v1 = vld [vmem:[%s2145_s9 + $0x20] sm:$0xff] (!%p1522_p6)  }
 0x303   : > { %v1023_v13 = vadd.f32 1.0, %v1019_v5  ;;  %v1020_v14 = vmul.f32 %v1016_v9, %v936_v12  ;;  %v1524_v5 = vld [vmem:[%s2138_s2 + $0x2] ss:$0 sm:$0xff] (!%p1522_p6) }
 0x304   : > { %v1026_v10 = vadd.f32 1.0, %v1022_v3  ;;  %v1029_v16 = vmul.f32 %v1025_v40, %v925_v11  ;;  %v1762_v11 = vld [vmem:[%s2145_s9 + $0x30] sm:$0xff] (!%p1522_p6)  }
 0x305   : > { %v1024_v22 = vadd.f32 1.0, %v1020_v14  ;;  %v1027_v23 = vmul.f32 %v1023_v13, %v923_v15 }
 0x306   : > { %v1030_v21 = vmul.f32 %v1026_v10, %v926_v42  ;;  %v1763_v10 = vld [vmem:[%s2145_s9 + $0x38] sm:$0xff] (!%p1522_p6)  }
 0x307   : > { %v1028_v25 = vmul.f32 %v1024_v22, %v924_v49  ;;  %v1525_v49 = vld [vmem:[%s2146_s10] ss:$0 sm:$0xff] (!%p1522_p6) }
 0x308   : > { %v1032_v24 = vpack.c.bf16 %v1030_v21, %v1029_v16  ;;  %v1322_v16 = vlaneseq (!%p1522_p6) }
 0x309   : > { %v1031_v26 = vpack.c.bf16 %v1028_v25, %v1027_v23 }
 0x30a   : > { %v1323_v21 = vand.u32 (!%p1522_p6), 127, %v1322_v16 }
 0x30b   : > { %1653 = vmatprep.mubr.bf16.mxu1 %v1031_v26 }
 0x30c   : > { %1654 = vmatmul.mubr.bf16.vlgmr.msra.gmra.mrb[4].mxu1 %v1032_v24  ;;  %vm1324_vm8 = vcmp.lt.s32.totalorder (!%p1522_p6), %v1323_v21, 10 }
 0x3df   : > { %v1655_v28 = vpop.f32.mrb[4].mxu1 }
 0x3e0   : > { %v1144_v29 = vadd.f32 %v1655_v28, %v1512_v33  ;;  %v1135_v38 = vpop.f32.mrb[5].mxu1 }
 0x3e1   : > { %v1136_v30 = vadd.f32 %v1512_v33, %v1135_v38  ;;  %v1656_v31 = vpop.f32.mrb[6].mxu1 }
 0x3e2   : > { %v1156_v32 = vmul.f32 %v1521_v27, %v1144_v29  ;;  %v1147_v35 = vadd.f32 %v1656_v31, %v1512_v33  ;;  %v1138_v34 = vpop.f32.mrb[7].mxu1 }
 0x3e3   : > { %v1154_v36 = vmul.f32 %v1521_v27, %v1136_v30  ;;  %v1139_v39 = vadd.f32 %v1512_v33, %v1138_v34  ;;  %1169 = sbr.rel (%p1522_p6) target bundleno = 1561 (0x619), region = 72 }
 0x3e4   : > { %v1160_v43 = vadd.f32 %v1156_v32, %v2002_v17  ;;  %v1157_v41 = vmul.f32 %v1521_v27, %v1147_v35 }
 0x3e5   : > { %v1158_v44 = vadd.f32 %v1154_v36, %v2006_v19  ;;  %v1155_v45 = vmul.f32 %v1521_v27, %v1139_v39 }
 0x3e6   : > { %1164 = vst [vmem:[#allocation2 + $0x10] sm:$0xff] %v1160_v43  ;;  %v1161_v46 = vadd.f32 %v1157_v41, %v2004_v18  ;;  %v1757_v18 = vld [vmem:[%s2145_s9 + $0x8] sm:$0xff] (!%p1522_p6)  }
 0x3e7   : > { %1162 = vst [vmem:[#allocation2] sm:$0xff] %v1158_v44  ;;  %v1159_v47 = vadd.f32 %v1155_v45, %v2008_v20  ;;  %1660 = vmatpush3.bf16.msra.mxu0 (!%p1522_p6), %v1757_v18 }
 0x3e8   : > { %1165 = vst [vmem:[#allocation2 + $0x18] sm:$0xff] %v1161_v46  ;;  %v1177_v50 = vadd.f32 (!%p1522_p6), %v1161_v46, %v1160_v43  ;;  %1661 = vmatprep.subr.bf16.mxu0 (!%p1522_p6), %v1826_v51 }
 0x3e9   : > { %1163 = vst [vmem:[#allocation2 + $0x8] sm:$0xff] %v1159_v47  ;;  %v1170_v17 = vadd.f32 (!%p1522_p6), %v1159_v47, %v1158_v44 }
 0x3ea   : > { %v1178_v20 = vrot.slane %v1177_v50, 4 }
 0x3eb   : > { %v1171_v19 = vrot.slane %v1170_v17, 4  ;;  %1662 = vmatpush3.bf16.msra.mxu0 %v1758_v54 }
 0x3ec   : > { %v1179_v53 = vadd.f32 %v1178_v20, %v1177_v50  ;;  %1663 = vmatprep.subr.bf16.mxu0 %v1826_v51 }
 0x3ed   : > { %v1172_v52 = vadd.f32 %v1171_v19, %v1170_v17 }
 0x3ee   : > { %v1180_v56 = vrot.slane %v1179_v53, 2 }
 0x3ef   : > { %v1173_v55 = vrot.slane %v1172_v52, 2  ;;  %1664 = vmatpush3.bf16.msra.mxu0 %v1759_v60 }
 0x3f0   : > { %v1181_v59 = vadd.f32 %v1180_v56, %v1179_v53  ;;  %1665 = vmatprep.subr.bf16.mxu0 %v1826_v51 }
 0x3f1   : > { %v1174_v57 = vadd.f32 %v1173_v55, %v1172_v52 }
 0x3f2   : > { %v1182_v63 = vrot.slane %v1181_v59, 1 }
 0x3f3   : > { %v1175_v62 = vrot.slane %v1174_v57, 1  ;;  %1666 = vmatpush3.bf16.msra.mxu0 %v1760_v1 }
 0x3f4   : > { %v1183_v58 = vadd.f32 %v1182_v63, %v1181_v59  ;;  %1667 = vmatprep.subr.bf16.mxu0 %v1826_v51 }
 0x3f5   : > { %v1176_v0 = vadd.f32 %v1175_v62, %v1174_v57 }
 0x3f6   : > { %v1185_v4 = vmul.f32 0.0625, %v1183_v58 }
 0x3f7   : > { %v1184_v61 = vmul.f32 0.0625, %v1176_v0  ;;  %1668 = vmatpush3.bf16.msra.mxu0 %v1761_v7 }
 0x3f8   : > { %v1192_v6 = vmul.f32 %v1523_v2, %v1185_v4  ;;  %1669 = vmatprep.subr.bf16.mxu0 %v1826_v51 }
 0x3f9   : > { %v1191_v37 = vmul.f32 %v1523_v2, %v1184_v61 }
 0x3fa   : > { %v1199_v40 = vadd.f32 %v1524_v5, %v1192_v6 }
 0x3fb   : > { %v1198_v8 = vadd.f32 %v1524_v5, %v1191_v37  ;;  %1670 = vmatpush3.bf16.msra.mxu0 %v1762_v11 }
 0x3fc   : > { %v1201_v9 = vpack.c.bf16 %v1199_v40, %v1199_v40  ;;  %1671 = vmatprep.subr.bf16.mxu0 %v1826_v51 }
 0x3fd   : > { %v1200_v3 = vpack.c.bf16 %v1198_v8, %v1198_v8 }
 0x3fe   : > { %v1228_v13 = vunpack.c.l.b16 %v1201_v9 }
 0x3ff   : > { %v1227_v12 = vunpack.c.l.b16 %v1200_v3  ;;  %1672 = vmatpush3.bf16.msra.mxu0 %v1763_v10 }
 0x400   : > { %v1229_v42 = vrot.slane %v1228_v13, 7 }
 0x402   : > { %v1231_v14 = vsel %vm1230_vm7, %v1229_v42, %v1227_v12 }
 0x403   : > { %v1232_v15 = vpack.c.b16 %v1231_v14, %v1231_v14 }
 0x405   : > { %1674 = vmatmul.mubr.bf16.vlgmr.msra.gmra.mrb[0].mxu0 %v1232_v15 }
 0x4d8   : > { %v1316_v22 = vpop.f32.mrb[0].mxu0 }
 0x4d9   : > { %v1317_v23 = vadd.f32 %v1525_v49, %v1316_v22  ;;  %v1675_v24 = vpop.f32.mrb[1].mxu0 }
 0x4da   : > { %v1319_v25 = vpop.f32.mrb[2].mxu0 }
 0x4db   : > { %v1676_v26 = vpop.f32.mrb[3].mxu0  ;;  %v1325_v33 = vsel %vm1324_vm8, %v1317_v23, -1e+30 }
 0x4dc   : > { %v1327_v27 = vsel %vm1326_vm9, %v1325_v33, -inf }
 0x4dd   : > { %1328 = vmax.xlane.f32.xlu0 %v1327_v27 }
 0x56a   : > { %v1329_v28 = vpop.xlane.xlu0 %1328 }
 0x56b   : > { %v1330_v29 = vsub.f32 %v1325_v33, %v1329_v28 }
 0x56d   : > { %v1331_v38 = vmul.f32 1.442695, %v1330_v29 }
 0x56f   : > { %1764 = vpow2.f32 %v1331_v38 }
 0x579   : > { %v1765_v30 = vpop.eup %1764 }
 0x57a   : > { %v1333_v31 = vsel %vm1326_vm9, %v1765_v30, 0.0 }
 0x57b   : > { %1334 = vadd.xlane.f32.xlu0 %v1333_v31 }
 0x608   : > { %v1335_v32 = vpop.xlane.xlu0 %1334 }
 0x609   : > { %1766 = vlog2.f32 %v1335_v32 }
 0x613   : > { %v1767_v35 = vpop.eup %1766 }
 0x614   : > { %v1337_v34 = vmul.f32 0.6931472, %v1767_v35 }
 0x616   : > { %v1338_v36 = vsub.f32 %v1330_v29, %v1337_v34 }
 0x618   : > { %1339 = vst [vmem:[#allocation3] sm:$0x3] %v1338_v36 }
 0x619 PF: > { %s2155_s14 = sadd.s32 4294967295, %s1820_s19   ;;  %s1828_s17 = smov [#allocation3]  }
 0x61a   : > { %p2101_p7 = scmp.eq.s32.totalorder %s2155_s14, 1  ;;  %s1349_s24 = sshll.u32 %s1828_s17, 4  ;;  %s1350_s24 = int_to_ptr.vmem [resolvable:$true] %s1349_s24 }
 0x61b   : > { %s1768_s29 = scalar_lea.vmem %s1350_s24, 32  ;;  %p1775_p11 = scmp.lt.s32.totalorder %s1350_s24, %s1350_s24 }
 0x61c   : > { %p1769_p8 = scmp.ne.s32.totalorder %s1350_s24, %s1768_s29  ;;  %p1776_p12 = scmp.lt.s32.totalorder %s1768_s29, %s1768_s29 }
 0x61e   : > { %p1770_p9 = pnand %p1769_p8, %p2101_p7  ;;  %p1777_p13 = por %p1776_p12, %p1775_p11 }
 0x620   : > { %p1771_p10 = pneg %p1770_p9 }
 0x622   : > { %p1778_p0 = pnand %p1777_p13, %p1771_p10 }
 0x624   : > { %1781 = shalt.err (!%p1778_p0)
}
 0x625   : > { %s2157_s18 = sld [smem:[#allocation9_spill]] }
 0x62b   : > { %s2158_s3 = smov %s2157_s18  ;;  %s1782_s21 = scalar_lea.hbm %s2157_s18, 32 }
 0x62c   : > { %p1783_p1 = scmp.ne.s32.totalorder %s2158_s3, %s1782_s21  ;;  %p1788_p4 = scmp.lt.u32.totalorder %s1782_s21, %s2158_s3 }
 0x62e   : > { %p1784_p2 = pnand %p1783_p1, %p2101_p7 }
 0x630   : > { %p1785_p3 = pneg %p1784_p2 }
 0x632   : > { %p1790_p5 = pnand %p1788_p4, %p1785_p3 }
 0x634   : > { %1793 = shalt.err (!%p1790_p5)
}
 0x635   : > { %1678 = dma.vmem_to_hbm [thread:$0]  (%p2101_p7), %s1350_s24, 32, %s2158_s3, [#allocation4]  }
 0x636   : > { %1807 = dma.done.wait (%p2101_p7), [#allocation4], 32  }
 0x637   : > { %1809 = vsyncadd (%p2101_p7), [#allocation4], 4294967264 }
 0x638 PF: > { %s22_s19 = sadd.s32 1, %s1820_s19   ;;  %s2159_s17 = sld [smem:[#allocation6_spill]] }
 0x639   : > { %p19_p6 = scmp.ge.s32.totalorder %s22_s19, 4   ;;  %s2160_s18 = sld [smem:[#allocation7_spill]] }
 0x63b   :  { %21 = sbr.rel (!%p19_p6) target bundleno = 5 (0x5), region = 118 }
 0x642   :  { %1362 = vsyncpa [#allocation4], 1 }
 0x643   :  { %1364 = vsyncpa [#allocation4 + $0x1], 1 }

</bundles_post_ra>
